<compile_context>
chip_gen: v7x
topology: tpu7x:2x2x1
jax: 0.10.0
libtpu: 0.0.40
codegen_flags: <defaults>
</compile_context>

<pallas_src>
import functools
import math

import jax
import jax.numpy as jnp
from jax.experimental import pallas as pl
from jax.experimental.pallas import tpu as pltpu


_MASK = -1e30  # additive mask value / softmax-max init (avoids inf-inf NaNs)


# ----------------------------------------------------------------------------
# helpers: tile sizing from VMEM budget
# ----------------------------------------------------------------------------
def _round_up(x, m):
    return ((x + m - 1) // m) * m


def _dtype_pack(dtype):
    # sublane packing: 8 rows for 4-byte, 16 for 2-byte, 32 for 1-byte dtypes
    return max(8, 32 // jnp.dtype(dtype).itemsize)


def _tpu_vmem_capacity():
    try:
        info = pltpu.get_tpu_info()
        cap = getattr(info, "vmem_capacity_bytes", None)
        if cap:
            return int(cap)
    except Exception:
        pass
    return 64 * 1024 * 1024  # conservative (v7x-sized) fallback


def _compiler_params(dimension_semantics):
    return pltpu.CompilerParams(
        dimension_semantics=dimension_semantics,
        vmem_limit_bytes=int(_tpu_vmem_capacity() * 0.9),
    )


def _pick_col_tile(n, cap=512):
    """Full N if small, else the largest 256-aligned (then 128-aligned) divisor <= cap."""
    if n <= cap:
        return n
    for step in (256, 128):
        t = (cap // step) * step
        while t >= step:
            if n % t == 0:
                return t
            t -= step
    return n  # no aligned divisor -> take full width (equals full array dim)


def _pick_k_tile(k, cap=512):
    if k <= cap:
        return k
    t = (cap // 128) * 128
    while t >= 128:
        if k % t == 0:
            return t
        t -= 128
    return k


def _seq_tile(s, cap=256):
    if s <= cap:
        return s
    t = (cap // 8) * 8
    while t >= 8:
        if s % t == 0:
            return t
        t -= 8
    return s


def _pick_row_tile(rows, per_row_bytes, fixed_bytes, pack):
    """Largest row tile (multiple of sublane packing) fitting the VMEM budget.

    per_row_bytes must account for double-buffered activation/output blocks AND
    the f32 accumulator scratch (v7x 64 MiB feedback)."""
    cap_bytes = _tpu_vmem_capacity()
    budget = int(cap_bytes * 0.5)
    avail = max(budget - fixed_bytes, pack * per_row_bytes)
    tm = (avail // max(per_row_bytes, 1) // pack) * pack
    row_cap = 2048 if cap_bytes >= (96 << 20) else 1024   # relax cap on 128 MiB parts
    tm = max(pack, min(int(tm), row_cap))
    if tm >= 256:
        tm = (tm // 256) * 256                             # MXU-friendly M on v6e/v7x
    tm = min(tm, _round_up(rows, pack))
    return int(tm)


def _maybe_split_rows(rows, tm, n, tn, pack):
    """v7x has 2 TensorCores: keep >=2 steps along a parallel grid axis when possible."""
    if pl.cdiv(rows, tm) * pl.cdiv(n, tn) >= 2 or rows <= pack:
        return tm
    half = (pl.cdiv(rows, 2) // pack) * pack
    return max(pack, half)


# ----------------------------------------------------------------------------
# kernel bodies
# ----------------------------------------------------------------------------
def _rmsnorm_matmul_kernel(x_ref, w_ref, o_ref, acc_ref, ssq_ref, *, eps, k_total):
    kk = pl.program_id(2)

    @pl.when(kk == 0)
    def _():
        acc_ref[...] = jnp.zeros_like(acc_ref)
        ssq_ref[...] = jnp.zeros_like(ssq_ref)

    x = x_ref[...]                       # activation dtype -> native MXU path
    acc_ref[...] += jnp.dot(x, w_ref[...], preferred_element_type=jnp.float32)
    xf = x.astype(jnp.float32)
    ssq_ref[...] += jnp.sum(xf * xf, axis=-1, keepdims=True)

    @pl.when(kk == pl.num_programs(2) - 1)
    def _():
        inv = jax.lax.rsqrt(ssq_ref[...] * (1.0 / k_total) + eps)
        o_ref[...] = (acc_ref[...] * inv).astype(o_ref.dtype)


def _rmsnorm_swiglu_kernel(x_ref, wg_ref, wu_ref, o_ref,
                           accg_ref, accu_ref, ssq_ref, *, eps, k_total):
    kk = pl.program_id(2)

    @pl.when(kk == 0)
    def _():
        accg_ref[...] = jnp.zeros_like(accg_ref)
        accu_ref[...] = jnp.zeros_like(accu_ref)
        ssq_ref[...] = jnp.zeros_like(ssq_ref)

    x = x_ref[...]
    accg_ref[...] += jnp.dot(x, wg_ref[...], preferred_element_type=jnp.float32)
    accu_ref[...] += jnp.dot(x, wu_ref[...], preferred_element_type=jnp.float32)
    xf = x.astype(jnp.float32)
    ssq_ref[...] += jnp.sum(xf * xf, axis=-1, keepdims=True)

    @pl.when(kk == pl.num_programs(2) - 1)
    def _():
        inv = jax.lax.rsqrt(ssq_ref[...] * (1.0 / k_total) + eps)
        gate = accg_ref[...] * inv
        up = accu_ref[...] * inv
        o_ref[...] = (jax.nn.silu(gate) * up).astype(o_ref.dtype)


def _matmul_residual_kernel(a_ref, w_ref, r_ref, o_ref, acc_ref):
    kk = pl.program_id(2)

    @pl.when(kk == 0)
    def _():
        acc_ref[...] = jnp.zeros_like(acc_ref)

    acc_ref[...] += jnp.dot(a_ref[...], w_ref[...], preferred_element_type=jnp.float32)

    @pl.when(kk == pl.num_programs(2) - 1)
    def _():
        o_ref[...] = (r_ref[...].astype(jnp.float32) + acc_ref[...]).astype(o_ref.dtype)


def _rope_rotate(x, cos, sin_signed):
    """Interleaved rotary embedding on a (rows, head_dim) tile.

    cos is the pair-replicated cos table, sin_signed the interleaved (-sin, +sin)
    table; the pair partner is gathered with lane rolls (XLU slot, ~free)."""
    d = x.shape[-1]
    xf = x.astype(jnp.float32)
    nxt = pltpu.roll(xf, shift=d - 1, axis=1)   # element i+1 (used on even lanes)
    prv = pltpu.roll(xf, shift=1, axis=1)       # element i-1 (used on odd lanes)
    even = (jax.lax.broadcasted_iota(jnp.int32, x.shape, 1) % 2) == 0
    swapped = jnp.where(even, nxt, prv)
    return xf * cos.astype(jnp.float32) + swapped * sin_signed.astype(jnp.float32)


def _flash_attn_kernel(q_ref, k_ref, v_ref, cq_ref, sq_ref, ck_ref, sk_ref,
                       o_ref, qrot_ref, m_ref, l_ref, acc_ref, *,
                       scale, tq, tk, causal):
    ki = pl.program_id(3)
    n_kv = pl.num_programs(3)

    @pl.when(ki == 0)
    def _():
        # rotate q once per q-tile; keep it in the activation dtype for the MXU
        qrot_ref[...] = _rope_rotate(q_ref[...], cq_ref[...], sq_ref[...]
                                     ).astype(qrot_ref.dtype)
        m_ref[...] = jnp.full(m_ref.shape, _MASK, m_ref.dtype)
        l_ref[...] = jnp.zeros_like(l_ref)
        acc_ref[...] = jnp.zeros_like(acc_ref)

    q_start = pl.program_id(2) * tq
    kv_start = ki * tk

    def _step():
        k = _rope_rotate(k_ref[...], ck_ref[...], sk_ref[...]).astype(k_ref.dtype)
        s = jax.lax.dot_general(qrot_ref[...], k, (((1,), (1,)), ((), ())),
                                preferred_element_type=jnp.float32) * scale
        if causal:
            q_ids = q_start + jax.lax.broadcasted_iota(jnp.int32, (tq, tk), 0)
            kv_ids = kv_start + jax.lax.broadcasted_iota(jnp.int32, (tq, tk), 1)
            s = jnp.where(kv_ids <= q_ids, s, _MASK)
        m_prev = m_ref[...]
        m_new = jnp.maximum(m_prev, jnp.max(s, axis=-1, keepdims=True))
        alpha = jnp.exp(m_prev - m_new)
        p = jnp.exp(s - m_new)
        l_ref[...] = alpha * l_ref[...] + jnp.sum(p, axis=-1, keepdims=True)
        acc_ref[...] = alpha * acc_ref[...] + jnp.dot(
            p.astype(v_ref.dtype), v_ref[...], preferred_element_type=jnp.float32)
        m_ref[...] = m_new

    if causal:
        # skip kv tiles that are entirely in the future of this q tile
        pl.when(kv_start <= q_start + (tq - 1))(_step)
    else:
        _step()

    @pl.when(ki == n_kv - 1)
    def _():
        o_ref[...] = (acc_ref[...] * pl.reciprocal(l_ref[...], approx=True)
                      ).astype(o_ref.dtype)


# ----------------------------------------------------------------------------
# pallas_call wrappers
# ----------------------------------------------------------------------------
def fused_rmsnorm_matmul(x2, w, eps):
    """out = RMSNorm(x2) @ w, with the norm weight already folded into w."""
    rows, k = x2.shape
    n = w.shape[1]
    dt = x2.dtype
    bp = jnp.dtype(dt).itemsize
    pack = _dtype_pack(dt)
    tn = _pick_col_tile(n)
    tkd = _pick_k_tile(k)
    fixed = 2 * tkd * tn * bp
    per_row = 2 * bp * tkd + 2 * bp * tn + 4 * tn + 4   # x + out (x2 buf) + f32 acc + ssq
    tm = _pick_row_tile(rows, per_row, fixed, pack)
    tm = _maybe_split_rows(rows, tm, n, tn, pack)
    grid = (pl.cdiv(rows, tm), pl.cdiv(n, tn), pl.cdiv(k, tkd))

    return pl.pallas_call(
        functools.partial(_rmsnorm_matmul_kernel, eps=eps, k_total=float(k)),
        out_shape=jax.ShapeDtypeStruct((rows, n), dt),
        grid_spec=pltpu.PrefetchScalarGridSpec(
            num_scalar_prefetch=0,
            grid=grid,
            in_specs=[
                pl.BlockSpec((tm, tkd), lambda i, j, kk: (i, kk)),
                pl.BlockSpec((tkd, tn), lambda i, j, kk: (kk, j)),
            ],
            out_specs=pl.BlockSpec((tm, tn), lambda i, j, kk: (i, j)),
            scratch_shapes=[pltpu.VMEM((tm, tn), jnp.float32),
                            pltpu.VMEM((tm, 1), jnp.float32)],
        ),
        compiler_params=_compiler_params(("parallel", "parallel", "arbitrary")),
        cost_estimate=pl.CostEstimate(
            flops=int(2 * rows * k * n + 3 * rows * k),
            transcendentals=int(rows),
            bytes_accessed=int((rows * k + k * n + rows * n) * bp),
        ),
    )(x2, w)


def fused_rmsnorm_swiglu(x2, w_gate, w_up, eps):
    rows, k = x2.shape
    n = w_gate.shape[1]
    dt = x2.dtype
    bp = jnp.dtype(dt).itemsize
    pack = _dtype_pack(dt)
    tn = _pick_col_tile(n)
    tkd = _pick_k_tile(k)
    fixed = 2 * 2 * tkd * tn * bp
    per_row = 2 * bp * tkd + 2 * bp * tn + 2 * 4 * tn + 4
    tm = _pick_row_tile(rows, per_row, fixed, pack)
    tm = _maybe_split_rows(rows, tm, n, tn, pack)
    grid = (pl.cdiv(rows, tm), pl.cdiv(n, tn), pl.cdiv(k, tkd))

    return pl.pallas_call(
        functools.partial(_rmsnorm_swiglu_kernel, eps=eps, k_total=float(k)),
        out_shape=jax.ShapeDtypeStruct((rows, n), dt),
        grid_spec=pltpu.PrefetchScalarGridSpec(
            num_scalar_prefetch=0,
            grid=grid,
            in_specs=[
                pl.BlockSpec((tm, tkd), lambda i, j, kk: (i, kk)),
                pl.BlockSpec((tkd, tn), lambda i, j, kk: (kk, j)),
                pl.BlockSpec((tkd, tn), lambda i, j, kk: (kk, j)),
            ],
            out_specs=pl.BlockSpec((tm, tn), lambda i, j, kk: (i, j)),
            scratch_shapes=[pltpu.VMEM((tm, tn), jnp.float32),
                            pltpu.VMEM((tm, tn), jnp.float32),
                            pltpu.VMEM((tm, 1), jnp.float32)],
        ),
        compiler_params=_compiler_params(("parallel", "parallel", "arbitrary")),
        cost_estimate=pl.CostEstimate(
            flops=int(4 * rows * k * n + 8 * rows * n + 3 * rows * k),
            transcendentals=int(rows * n + rows),
            bytes_accessed=int((rows * k + 2 * k * n + rows * n) * bp),
        ),
    )(x2, w_gate, w_up)


def matmul_residual(a2, w, res2):
    rows, k = a2.shape
    n = w.shape[1]
    dt = res2.dtype
    bp = jnp.dtype(dt).itemsize
    pack = _dtype_pack(dt)
    tn = _pick_col_tile(n)
    tkd = _pick_k_tile(k)
    fixed = 2 * tkd * tn * bp
    per_row = 2 * bp * tkd + 2 * 2 * bp * tn + 4 * tn   # a + (out, residual) + f32 acc
    tm = _pick_row_tile(rows, per_row, fixed, pack)
    tm = _maybe_split_rows(rows, tm, n, tn, pack)
    grid = (pl.cdiv(rows, tm), pl.cdiv(n, tn), pl.cdiv(k, tkd))

    return pl.pallas_call(
        _matmul_residual_kernel,
        out_shape=jax.ShapeDtypeStruct((rows, n), dt),
        grid_spec=pltpu.PrefetchScalarGridSpec(
            num_scalar_prefetch=0,
            grid=grid,
            in_specs=[
                pl.BlockSpec((tm, tkd), lambda i, j, kk: (i, kk)),
                pl.BlockSpec((tkd, tn), lambda i, j, kk: (kk, j)),
                pl.BlockSpec((tm, tn), lambda i, j, kk: (i, j)),
            ],
            out_specs=pl.BlockSpec((tm, tn), lambda i, j, kk: (i, j)),
            scratch_shapes=[pltpu.VMEM((tm, tn), jnp.float32)],
        ),
        compiler_params=_compiler_params(("parallel", "parallel", "arbitrary")),
        cost_estimate=pl.CostEstimate(
            flops=int(2 * rows * k * n + rows * n),
            transcendentals=0,
            bytes_accessed=int((rows * k + k * n + 2 * rows * n) * bp),
        ),
    )(a2, w, res2)


def flash_attention(qkv, cos, sin, n_heads, *, causal=True):
    """Flash attention with fused RoPE, reading q/k/v straight out of the fused
    QKV projection output via block index maps (no HBM slicing copies)."""
    b, s, dim3 = qkv.shape
    dim = dim3 // 3
    assert dim % n_heads == 0
    dh = dim // n_heads
    assert dh % 128 == 0, "head_dim must be a multiple of 128 (TPU lane width)"
    scale = 1.0 / math.sqrt(dh)
    dt = qkv.dtype
    tq = _seq_tile(s, 256)
    tk = _seq_tile(s, 256)
    grid = (b, n_heads, s // tq, s // tk)

    q_spec = pl.BlockSpec((None, tq, dh), lambda bi, h, qi, ki: (bi, qi, h))
    k_spec = pl.BlockSpec((None, tk, dh), lambda bi, h, qi, ki: (bi, ki, n_heads + h))
    v_spec = pl.BlockSpec((None, tk, dh), lambda bi, h, qi, ki: (bi, ki, 2 * n_heads + h))
    rope_q = pl.BlockSpec((tq, dh), lambda bi, h, qi, ki: (qi, 0))
    rope_k = pl.BlockSpec((tk, dh), lambda bi, h, qi, ki: (ki, 0))

    return pl.pallas_call(
        functools.partial(_flash_attn_kernel, scale=scale, tq=tq, tk=tk, causal=causal),
        out_shape=jax.ShapeDtypeStruct((b, s, dim), dt),
        grid_spec=pltpu.PrefetchScalarGridSpec(
            num_scalar_prefetch=0,
            grid=grid,
            in_specs=[q_spec, k_spec, v_spec, rope_q, rope_q, rope_k, rope_k],
            out_specs=pl.BlockSpec((None, tq, dh), lambda bi, h, qi, ki: (bi, qi, h)),
            scratch_shapes=[pltpu.VMEM((tq, dh), dt),          # rotated q
                            pltpu.VMEM((tq, 1), jnp.float32),  # running max
                            pltpu.VMEM((tq, 1), jnp.float32),  # running denom
                            pltpu.VMEM((tq, dh), jnp.float32)],  # output accumulator
        ),
        compiler_params=_compiler_params(
            ("parallel", "parallel", "parallel", "arbitrary")),
        cost_estimate=pl.CostEstimate(
            flops=int(4 * b * n_heads * s * s * dh + 12 * b * s * dim),
            transcendentals=int(b * n_heads * s * s),
            bytes_accessed=int((4 * b * s * dim + 2 * s * dh) * jnp.dtype(dt).itemsize),
        ),
    )(qkv, qkv, qkv, cos, sin, cos, sin)


# ----------------------------------------------------------------------------
# one-time parameter prep (hoisted out of the forward)
# ----------------------------------------------------------------------------
def prepare_params(params, cos, sin, dtype):
    """Fold RMSNorm weights into the consumer projections, fuse the QKV weights,
    cast everything to the activation dtype and build interleaved rope tables.
    Call once at init -- not per forward."""
    g_attn = params["attn_norm_w"].astype(jnp.float32)[:, None]
    g_ffn = params["ffn_norm_w"].astype(jnp.float32)[:, None]
    w_qkv = jnp.concatenate(
        [params["wq"], params["wk"], params["wv"]], axis=1).astype(jnp.float32)
    seq, half = cos.shape
    cos_il = jnp.repeat(cos.astype(jnp.float32), 2, axis=-1)                 # (S, Dh)
    sin_il = jnp.stack([-sin, sin], axis=-1).reshape(seq, 2 * half)          # (S, Dh)
    return {
        "w_qkv": (g_attn * w_qkv).astype(dtype),
        "wo": params["wo"].astype(dtype),
        "w_gate": (g_ffn * params["w_gate"].astype(jnp.float32)).astype(dtype),
        "w_up": (g_ffn * params["w_up"].astype(jnp.float32)).astype(dtype),
        "w_out": params["w_out"].astype(dtype),
        "cos": cos_il.astype(dtype),
        "sin": sin_il.astype(dtype),
    }


# ----------------------------------------------------------------------------
# full TransformerBlock forward
# ----------------------------------------------------------------------------
def transformer_block(x, prepared, *, n_heads, eps=1e-6):
    """x: (B, S, dim); prepared: output of prepare_params. Causal attention."""
    b, s, dim = x.shape
    rows = b * s
    x2 = x.reshape(rows, dim)

    # ---------------- attention branch ----------------
    qkv = fused_rmsnorm_matmul(x2, prepared["w_qkv"], eps)           # (rows, 3*dim)
    attn = flash_attention(qkv.reshape(b, s, 3 * dim),
                           prepared["cos"], prepared["sin"], n_heads, causal=True)
    h2 = matmul_residual(attn.reshape(rows, dim), prepared["wo"], x2)

    # ---------------- feed-forward branch ----------------
    mid = fused_rmsnorm_swiglu(h2, prepared["w_gate"], prepared["w_up"], eps)
    out2 = matmul_residual(mid, prepared["w_out"], h2)
    return out2.reshape(b, s, dim)


# ----------------------------------------------------------------------------
# pure-JAX reference (mirrors the PyTorch forward)
# ----------------------------------------------------------------------------
def ref_block(x, params, cos, sin, mask, n_heads, eps):
    prec = jax.lax.Precision.HIGHEST
    b, s, dim = x.shape
    dh = dim // n_heads

    def rms(v, w):
        vf = v.astype(jnp.float32)
        nrm = vf * jax.lax.rsqrt(jnp.mean(vf * vf, -1, keepdims=True) + eps)
        return nrm.astype(v.dtype) * w

    xn = rms(x, params["attn_norm_w"])
    q = jnp.einsum("bsd,dk->bsk", xn, params["wq"], precision=prec)
    k = jnp.einsum("bsd,dk->bsk", xn, params["wk"], precision=prec)
    v = jnp.einsum("bsd,dk->bsk", xn, params["wv"], precision=prec)
    q = q.reshape(b, s, n_heads, dh)
    k = k.reshape(b, s, n_heads, dh)
    v = v.reshape(b, s, n_heads, dh)

    def rope(t):
        tr = t.astype(jnp.float32).reshape(b, s, n_heads, dh // 2, 2)
        te, to = tr[..., 0], tr[..., 1]
        c = cos[None, :, None, :]
        sn = sin[None, :, None, :]
        oe = te * c - to * sn
        oo = te * sn + to * c
        return jnp.stack([oe, oo], -1).reshape(b, s, n_heads, dh).astype(t.dtype)

    q, k = rope(q), rope(k)
    q = q.transpose(0, 2, 1, 3)
    k = k.transpose(0, 2, 1, 3)
    v = v.transpose(0, 2, 1, 3)
    scores = jnp.einsum("bhqd,bhkd->bhqk", q, k, precision=prec) / math.sqrt(dh)
    scores = scores + mask[None, None]
    scores = scores - scores.max(-1, keepdims=True)
    p = jnp.exp(scores)
    p = p / p.sum(-1, keepdims=True)
    o = jnp.einsum("bhqk,bhkd->bhqd", p, v, precision=prec)
    o = o.transpose(0, 2, 1, 3).reshape(b, s, dim)
    h = x + jnp.einsum("bsd,dk->bsk", o, params["wo"], precision=prec)

    hn = rms(h, params["ffn_norm_w"])
    gate = jnp.einsum("bsd,dh->bsh", hn, params["w_gate"], precision=prec)
    up = jnp.einsum("bsd,dh->bsh", hn, params["w_up"], precision=prec)
    mid = jax.nn.silu(gate) * up
    out = h + jnp.einsum("bsh,hd->bsd", mid, params["w_out"], precision=prec)
    return out


# ----------------------------------------------------------------------------
if __name__ == "__main__":
    B, S, DIM, N_HEADS, MULTIPLE_OF = 2, 8, 256, 2, 32
    EPS = 1e-6
    DH = DIM // N_HEADS
    HIDDEN = int(2 * (4 * DIM) / 3)
    HIDDEN = MULTIPLE_OF * ((HIDDEN + MULTIPLE_OF - 1) // MULTIPLE_OF)

    key = jax.random.PRNGKey(0)
    ks = jax.random.split(key, 12)

    def w_init(k_, shape, fan_in):
        return jax.random.normal(k_, shape, jnp.float32) / math.sqrt(fan_in)

    x = jax.random.normal(ks[0], (B, S, DIM), jnp.float32)
    params = {
        "wq": w_init(ks[1], (DIM, DIM), DIM),
        "wk": w_init(ks[2], (DIM, DIM), DIM),
        "wv": w_init(ks[3], (DIM, DIM), DIM),
        "wo": w_init(ks[4], (DIM, DIM), DIM),
        "w_gate": w_init(ks[5], (DIM, HIDDEN), DIM),     # torch gate_proj.weight.T
        "w_up": w_init(ks[6], (DIM, HIDDEN), DIM),       # torch down_proj.weight.T (dim->hidden)
        "w_out": w_init(ks[7], (HIDDEN, DIM), HIDDEN),   # torch up_proj.weight.T (hidden->dim)
        "attn_norm_w": 1.0 + 0.1 * jax.random.normal(ks[8], (DIM,), jnp.float32),
        "ffn_norm_w": 1.0 + 0.1 * jax.random.normal(ks[9], (DIM,), jnp.float32),
    }

    # rotary frequencies (theta=10000), like llama precompute_freqs_cis
    inv_freq = 1.0 / (10000.0 ** (jnp.arange(0, DH, 2, dtype=jnp.float32) / DH))
    t = jnp.arange(S, dtype=jnp.float32)
    ang = jnp.outer(t, inv_freq)                  # (S, DH//2)
    cos, sin = jnp.cos(ang), jnp.sin(ang)

    # causal additive mask (reference only; the Pallas kernel builds it in-kernel)
    mask = jnp.where(jnp.tril(jnp.ones((S, S), dtype=bool)), 0.0, -1e9)
    mask = mask.astype(jnp.float32)

    prepared = prepare_params(params, cos, sin, x.dtype)   # one-time prep, not per call
    y = transformer_block(x, prepared, n_heads=N_HEADS, eps=EPS)
    jax.block_until_ready(y)

    ref = ref_block(x, params, cos, sin, mask, N_HEADS, EPS)
    assert y.shape == x.shape
    assert bool(jnp.all(jnp.isfinite(y)))
    assert jnp.allclose(y, ref, atol=2e-2, rtol=2e-2), float(jnp.max(jnp.abs(y - ref)))

    print("KERNEL_OK")
</pallas_src>

<mosaic_0001>
module attributes {stable_mosaic.version = 11 : i64} {
  func.func @_rmsnorm_matmul_kernel(%arg0: i32, %arg1: i32, %arg2: i32, %arg3: memref<16x256xf32, #tpu.memory_space<vmem>>, %arg4: memref<256x256xf32, #tpu.memory_space<vmem>>, %arg5: memref<16x256xf32, #tpu.memory_space<vmem>>, %arg6: memref<16x256xf32, #tpu.memory_space<vmem>>, %arg7: memref<16x1xf32, #tpu.memory_space<vmem>>) attributes {dimension_semantics = [#tpu.dimension_semantics<parallel>, #tpu.dimension_semantics<parallel>, #tpu.dimension_semantics<arbitrary>], iteration_bounds = array<i64: 1, 3, 1>, scalar_prefetch = 0 : i64, scratch_operands = 2 : i64, tpu.core_type = #tpu.core_type<tc>, window_params = [{transform_indices = @transform_0, window_bounds = array<i64: 16, 256>}, {transform_indices = @transform_1, window_bounds = array<i64: 256, 256>}, {transform_indices = @transform_2, window_bounds = array<i64: 16, 256>}]} {
    %c0_i32 = arith.constant 0 : i32
    %0 = arith.cmpi eq, %arg2, %c0_i32 : i32
    %1 = arith.extui %0 : i1 to i32
    %c0_i32_0 = arith.constant 0 : i32
    %2 = arith.cmpi ne, %1, %c0_i32_0 : i32
    scf.if %2 {
      %cst_15 = arith.constant 0.000000e+00 : f32
      %18 = vector.broadcast %cst_15 : f32 to vector<16x256xf32>
      %c0_16 = arith.constant 0 : index
      %c0_17 = arith.constant 0 : index
      %19 = vector.load %arg6[%c0_16, %c0_17] : memref<16x256xf32, #tpu.memory_space<vmem>>, vector<16x256xf32>
      tpu.vector_store %arg6[%c0_16, %c0_17], %18 {strides = array<i32>} : memref<16x256xf32, #tpu.memory_space<vmem>>, vector<16x256xf32>,
      %cst_18 = arith.constant 0.000000e+00 : f32
      %20 = vector.broadcast %cst_18 : f32 to vector<16x1xf32>
      %c0_19 = arith.constant 0 : index
      %c0_20 = arith.constant 0 : index
      %21 = vector.load %arg7[%c0_19, %c0_20] : memref<16x1xf32, #tpu.memory_space<vmem>>, vector<16x1xf32>
      tpu.vector_store %arg7[%c0_19, %c0_20], %20 {strides = array<i32>} : memref<16x1xf32, #tpu.memory_space<vmem>>, vector<16x1xf32>,
    } else {
    }
    %c0 = arith.constant 0 : index
    %c0_1 = arith.constant 0 : index
    %3 = vector.load %arg3[%c0, %c0_1] : memref<16x256xf32, #tpu.memory_space<vmem>>, vector<16x256xf32>
    %c0_2 = arith.constant 0 : index
    %c0_3 = arith.constant 0 : index
    %4 = vector.load %arg6[%c0_2, %c0_3] : memref<16x256xf32, #tpu.memory_space<vmem>>, vector<16x256xf32>
    %c0_4 = arith.constant 0 : index
    %c0_5 = arith.constant 0 : index
    %5 = vector.load %arg4[%c0_4, %c0_5] : memref<256x256xf32, #tpu.memory_space<vmem>>, vector<256x256xf32>
    %cst = arith.constant dense<0.000000e+00> : vector<16x256xf32>
    %6 = tpu.matmul %3, %5, %cst {dimension_numbers = #tpu.dot_dimension_numbers<[1], [0], [0], [1], [0, 0, 1, 1], [], []>} : vector<16x256xf32>, vector<256x256xf32>, vector<16x256xf32> -> vector<16x256xf32>
    %7 = arith.addf %4, %6 : vector<16x256xf32>
    %c0_6 = arith.constant 0 : index
    %c0_7 = arith.constant 0 : index
    %8 = vector.load %arg6[%c0_6, %c0_7] : memref<16x256xf32, #tpu.memory_space<vmem>>, vector<16x256xf32>
    tpu.vector_store %arg6[%c0_6, %c0_7], %7 {strides = array<i32>} : memref<16x256xf32, #tpu.memory_space<vmem>>, vector<16x256xf32>,
    %c0_8 = arith.constant 0 : index
    %c0_9 = arith.constant 0 : index
    %9 = vector.load %arg7[%c0_8, %c0_9] : memref<16x1xf32, #tpu.memory_space<vmem>>, vector<16x1xf32>
    %10 = arith.mulf %3, %3 : vector<16x256xf32>
    %cst_10 = arith.constant dense<0.000000e+00> : vector<16xf32>
    %11 = vector.multi_reduction <add>, %10, %cst_10 [1] : vector<16x256xf32> to vector<16xf32>
    %12 = vector.shape_cast %11 : vector<16xf32> to vector<16x1xf32>
    %13 = arith.addf %9, %12 : vector<16x1xf32>
    %c0_11 = arith.constant 0 : index
    %c0_12 = arith.constant 0 : index
    %14 = vector.load %arg7[%c0_11, %c0_12] : memref<16x1xf32, #tpu.memory_space<vmem>>, vector<16x1xf32>
    tpu.vector_store %arg7[%c0_11, %c0_12], %13 {strides = array<i32>} : memref<16x1xf32, #tpu.memory_space<vmem>>, vector<16x1xf32>,
    %c0_i32_13 = arith.constant 0 : i32
    %15 = arith.cmpi eq, %arg2, %c0_i32_13 : i32
    %16 = arith.extui %15 : i1 to i32
    %c0_i32_14 = arith.constant 0 : i32
    %17 = arith.cmpi ne, %16, %c0_i32_14 : i32
    scf.if %17 {
      %c0_15 = arith.constant 0 : index
      %c0_16 = arith.constant 0 : index
      %18 = vector.load %arg7[%c0_15, %c0_16] : memref<16x1xf32, #tpu.memory_space<vmem>>, vector<16x1xf32>
      %cst_17 = arith.constant 3.906250e-03 : f32
      %19 = vector.broadcast %cst_17 : f32 to vector<16x1xf32>
      %20 = arith.mulf %18, %19 : vector<16x1xf32>
      %cst_18 = arith.constant 9.99999997E-7 : f32
      %21 = vector.broadcast %cst_18 : f32 to vector<16x1xf32>
      %22 = arith.addf %20, %21 : vector<16x1xf32>
      %23 = math.rsqrt %22 : vector<16x1xf32>
      %c0_19 = arith.constant 0 : index
      %c0_20 = arith.constant 0 : index
      %24 = vector.load %arg6[%c0_19, %c0_20] : memref<16x256xf32, #tpu.memory_space<vmem>>, vector<16x256xf32>
      %25 = vector.broadcast %23 : vector<16x1xf32> to vector<16x256xf32>
      %26 = arith.mulf %24, %25 : vector<16x256xf32>
      %c0_21 = arith.constant 0 : index
      %c0_22 = arith.constant 0 : index
      %27 = vector.load %arg5[%c0_21, %c0_22] : memref<16x256xf32, #tpu.memory_space<vmem>>, vector<16x256xf32>
      tpu.vector_store %arg5[%c0_21, %c0_22], %26 {strides = array<i32>} : memref<16x256xf32, #tpu.memory_space<vmem>>, vector<16x256xf32>,
    } else {
    }
    return
  }
  func.func @transform_0(%arg0: i32, %arg1: i32, %arg2: i32) -> (i32, i32) {
    %c0_i32 = arith.constant 0 : i32
    return %arg0, %arg2 : i32, i32
  }
  func.func @transform_1(%arg0: i32, %arg1: i32, %arg2: i32) -> (i32, i32) {
    %c0_i32 = arith.constant 0 : i32
    return %arg2, %arg1 : i32, i32
  }
  func.func @transform_2(%arg0: i32, %arg1: i32, %arg2: i32) -> (i32, i32) {
    %c0_i32 = arith.constant 0 : i32
    return %arg0, %arg1 : i32, i32
  }
}

</mosaic_0001>

<bundles_post_ra>
// kernel: tpu_custom_call.1
= control target key start
LH: loop header
LB: loop body
LE: loop exit
PB: predicated region body
PF: predicated region fallthrough
CT: control target
= control target key end

     0   :  { %7 = vsyncpa [#allocation5], 0  ;;  %s1235_s0 = inlined_call_operand.hbm [shape: f32[16,256], index: 0, kind: input, shape index: {}]   ;;  %s1236_s1 = inlined_call_operand.hbm [shape: f32[256,768], index: 1, kind: input, shape index: {}]   ;;  %s1237_s2 = inlined_call_operand.hbm [shape: f32[16,768], index: 2, kind: output, shape index: {}]  }
   0x1   :  { %8 = vsyncpa [#allocation8], 0 }
   0x2   :  { %10 = vsyncpa [#allocation8 + $0x1], 0 }
   0x3   :  { %11 = vsyncpa [#allocation6], 0 }
   0x4   :  { %13 = vsyncpa [#allocation6 + $0x1], 0  ;;  %s938_s9 = smov 0   ;;  %s940_s10 = smov 0  }
   0x5   :  { %s942_s11 = smov 0   ;;  %s944_s12 = smov 0  }
   0x6   :  { %s946_s13 = smov 0   ;;  %s948_s14 = smov 0  }
   0x7 LB: > { %s564_s15 = sadd.s32 4294967295, %s910_s14   ;;  %s565_s16 = sadd.s32 4294967294, %s910_s14   ;;  %s910_s14 = sphi %s948_s14, %s19_s14   ;;  %s906_s13 = sphi %s946_s13, %s1262_s13   ;;  %s902_s12 = sphi %s944_s12, %s1261_s12   ;;  %s898_s11 = sphi %s942_s11, %s1260_s11   ;;  %s894_s10 = sphi %s940_s10, %s1259_s10   ;;  %s890_s9 = sphi %s938_s9, %s1258_s9  }
   0x8   : > { %p82_p0 = scmp.ne.s32.totalorder %s898_s11, %s894_s10  ;;  %p83_p1 = scmp.eq.s32.totalorder %s910_s14, 0 }
   0x9   : > { %p88_p2 = scmp.ne.s32.totalorder %s894_s10, %s890_s9  ;;  %p975_p3 = scmp.eq.s32.totalorder %s564_s15, 0 }
   0xa   : > { %p979_p4 = por %p83_p1, %p82_p0  ;;  %p114_p5 = scmp.eq.s32.totalorder %s564_s15, 2 }
   0xb   : > { %s1244_s17 = scalar_select %p975_p3, 1, 0 }
   0xc   : > { %p985_p6 = por %p975_p3, %p88_p2  ;;  %p120_p7 = scmp.eq.s32.totalorder %s565_s16, 2 }
   0xd   : > { %p989_p8 = por %p114_p5, %p82_p0  ;;  %p566_p9 = scmp.ge.s32.totalorder %s910_s14, 1 }
   0xe   : > { %s1246_s19 = scalar_select %p985_p6, 1, 0 }
   0xf   : > { %s1247_s20 = scalar_select %p989_p8, 1, 0 }
  0x10   : > { %p994_p10 = por %p120_p7, %p88_p2  ;;  %p127_p11 = scmp.lt.s32.totalorder %s910_s14, 4 }
  0x11   : > { %s912_s23 = smov [#allocation4]   ;;  %p700_p0 = scmp.lt.s32.totalorder %s910_s14, 3 }
  0x12   : > { %s1248_s21 = scalar_select %p994_p10, 1, 0 }
  0x13   : > { %p999_p12 = pnand %p566_p9, %p127_p11  ;;  %s145_s24 = sshll.u32 %s912_s23, 4  ;;  %s146_s24 = int_to_ptr.vmem [resolvable:$true] %s145_s24 }
  0x14   : > { %p1014_p2 = pnand %p700_p0, %p979_p4  ;;  %s34_s27 = sadd.s32 1, %s906_s13 }
  0x15   : > { %s1249_s22 = scalar_select %p999_p12, 1, 0 }
  0x16   : > { %p687_p13 = pneg %p999_p12  ;;  %s766_s30 = scalar_lea.hbm %s1235_s0, 512 }
  0x17   : > { %s1251_s26 = scalar_select %p1014_p2, 1, 0 }
  0x18   : > { %p1008_p1 = pnand %p687_p13, %p975_p3  ;;  %p767_p5 = scmp.ne.s32.totalorder %s1235_s0, %s766_s30 }
  0x19   : > { %p773_p4 = scmp.lt.u32.totalorder %s766_s30, %s1235_s0 }
  0x1a   : > { %p768_p7 = pneg %p1008_p1 }
  0x1c   : > { %p769_p9 = pnand %p768_p7, %p767_p5 }
  0x1e   : > { %p770_p11 = pneg %p769_p9 }
  0x20   : > { %p775_p13 = pnand %p773_p4, %p770_p11 }
  0x22   : > { %778 = shalt.err (!%p775_p13)
}
  0x23   : > { %s779_s7 = scalar_lea.vmem %s146_s24, 512  ;;  %p787_p6 = scmp.lt.s32.totalorder %s146_s24, %s146_s24 }
  0x24   : > { %p780_p0 = scmp.ne.s32.totalorder %s146_s24, %s779_s7  ;;  %p788_p3 = scmp.lt.s32.totalorder %s779_s7, %s779_s7 }
  0x26   : > { %p782_p10 = pnand %p780_p0, %p768_p7  ;;  %p789_p12 = por %p788_p3, %p787_p6 }
  0x28   : > { %p783_p8 = pneg %p782_p10 }
  0x2a   : > { %p790_p2 = pnand %p789_p12, %p783_p8 }
  0x2c   : > { %793 = shalt.err (!%p790_p2)
}
  0x2d   : > { %s913_s8 = smov 256   ;;  %s914_s15 = smov 16  }
  0x2e   : > { %690 = dma.hbm_to_vmem [thread:$0]  (!%p1008_p1), %s1235_s0, 512, %s146_s24, [#allocation5], %s913_s8, %s913_s8, %s914_s15  }
  0x2f   : > { %p36_p10 = scmp.ge.s32.totalorder %s34_s27, 3  ;;  %s75_s23 = sadd.s32 1, %s898_s11 }
  0x30   : > { %s159_s28 = sand.u32 1, %s898_s11   ;;  %s581_s3 = sshll.u32 %s906_s13, 8 }
  0x31   : > { %s1264_s27 = smov (%p36_p10, %s34_s27), 0  ;;  %s569_s29 = sshll.u32 %s159_s28, 9 }
  0x32   : > { %s71_s30 = ssub.s32 %s906_s13, %s1264_s27  ;;  %s1048_s5 = scalar_lea.hbm %s1236_s1, %s581_s3 }
  0x33   : > { %p73_p3 = scmp.eq.s32.totalorder %s71_s30, 0  ;;  %s163_s24 = scalar_lea.vmem [#allocation7], %s569_s29 }
  0x34   : > { %s173_s6 = sshll.u32 %s163_s24, 4  ;;  %s1055_s16 = scalar_lea.sflag [#allocation8], %s159_s28  ;;  %s1053_s6 = int_to_ptr.vmem [resolvable:$true] %s173_s6 }
  0x35   : > { %s1051_s7 = scalar_select %p73_p3, %s898_s11, %s75_s23  }
  0x36   : > { %s794_s18 = scalar_lea.hbm %s1048_s5, 8192  ;;  %p1252_p8 = scmp.ne.s32.totalorder %s1251_s26, 0 }
  0x37   : > { %p795_p6 = scmp.ne.s32.totalorder %s1048_s5, %s794_s18  ;;  %s799_s25 = scalar_lea.hbm %s1236_s1, 24576 }
  0x38   : > { %p796_p12 = pneg %p1252_p8  ;;  %p800_p5 = scmp.lt.u32.totalorder %s1048_s5, %s1236_s1 }
  0x39   : > { %p801_p7 = scmp.lt.u32.totalorder %s799_s25, %s794_s18  ;;  %p803_p11 = scmp.lt.u32.totalorder %s794_s18, %s1048_s5 }
  0x3a   : > { %p797_p1 = pnand %p796_p12, %p795_p6 }
  0x3b   : > { %p802_p9 = por %p801_p7, %p800_p5 }
  0x3c   : > { %p798_p2 = pneg %p797_p1 }
  0x3d   : > { %p804_p4 = por %p803_p11, %p802_p9 }
  0x3f   : > { %p805_p13 = pnand %p804_p4, %p798_p2 }
  0x41   : > { %808 = shalt.err (!%p805_p13)
}
  0x42   : > { %s809_s23 = scalar_lea.vmem %s1053_s6, 8192  ;;  %s915_s28 = smov [#allocation7]  }
  0x43   : > { %p810_p0 = scmp.ne.s32.totalorder %s1053_s6, %s809_s23  ;;  %s814_s24 = sshll.u32 %s915_s28, 4  ;;  %s815_s24 = int_to_ptr.vmem [resolvable:$false] %s814_s24 }
  0x44   : > { %s816_s30 = scalar_lea.vmem %s815_s24, 16384  ;;  %p817_p6 = scmp.lt.s32.totalorder %s1053_s6, %s815_s24 }
  0x45   : > { %p812_p10 = pnand %p810_p0, %p796_p12  ;;  %p818_p1 = scmp.lt.s32.totalorder %s816_s30, %s809_s23 }
  0x47   : > { %p813_p3 = pneg %p812_p10  ;;  %p819_p5 = por %p818_p1, %p817_p6 }
  0x49   : > { %p820_p7 = pnand %p819_p5, %p813_p3 }
  0x4b   : > { %823 = shalt.err (!%p820_p7)
}
  0x4c   : > { %s916_s18 = smov 768   ;;  %p1253_p12 = scmp.ne.s32.totalorder %s1249_s22, 0 }
  0x4d   : > { %694 = dma.hbm_to_vmem [thread:$0]  (!%p1252_p8), %s1048_s5, 8192, %s1053_s6, %s1055_s16, %s916_s18, %s913_s8, %s914_s15  }
  0x4e   : > { %185 = sbr.rel (%p1253_p12) target bundleno = 413 (0x19d), region = 28  ;;  %p1254_p2 = scmp.ne.s32.totalorder (!%p1253_p12), %s1244_s17, 0 }
  0x55   : > { %877 = dma.done.wait (%p1254_p2), [#allocation5], 512  }
  0x56   : > { %879 = vsyncadd (%p1254_p2), [#allocation5], 4294966784  ;;  %s1092_s3 = sand.u32 1, %s894_s10   ;;  %p1255_p8 = scmp.ne.s32.totalorder %s1246_s19, 0 }
  0x57   : > { %s574_s26 = sshll.u32 %s1092_s3, 9  ;;  %s192_s25 = scalar_lea.sflag [#allocation8], %s1092_s3 }
  0x58   : > { %s1096_s29 = scalar_lea.vmem [#allocation7], %s574_s26 }
  0x59   : > { %881 = dma.done.wait (%p1255_p8), %s192_s25, 8192  }
  0x5a   : > { %883 = vsyncadd (%p1255_p8), %s192_s25, 4294959104  ;;  %vm230_vm0 = vcmask 7168   ;;  %v917_v0 = vmov 0.0   ;;  %v1104_v1 = vld [vmem:[#allocation4] sm:$0xff]  ;;  %v234_v2 = vld [vmem:[#allocation4 + $0x8] sm:$0xff]  ;;  %v918_v60 = vmov 0  }
  0x5b   : > { %231 = vst.msk [vmem:[#allocation3] sm:$0xff] %vm230_vm0, %v917_v0  ;;  %232 = vst.msk [vmem:[#allocation3 + $0x8] sm:$0xff] %vm230_vm0, %v917_v0  ;;  %v1106_v3 = vld [vmem:[#allocation4 + $0x10] sm:$0xff]  ;;  %v392_v4 = vmul.f32 %v1104_v1, %v1104_v1  ;;  %v393_v5 = vmul.f32 %v234_v2, %v234_v2  ;;  %v236_v6 = vld [vmem:[#allocation4 + $0x18] sm:$0xff]  ;;  %369 = vmatprep.mubr.f32.mxu0 %v234_v2  ;;  %760 = vset.pattern.permute.xlu1 %v918_v60  ;;  %s575_s17 = sshll.u32 %s1092_s3, 5  ;;  %s582_s8 = sshll.u32 %s902_s12, 8 }
  0x5c   : > { %v394_v7 = vmul.f32 %v1106_v3, %v1106_v3  ;;  %v242_v8 = vld [vmem:[%s1096_s29 + $0x8] sm:$0xff]  ;;  %v244_v9 = vld [vmem:[%s1096_s29 + $0x18] sm:$0xff]  ;;  %v395_v10 = vmul.f32 %v236_v6, %v236_v6  ;;  %v241_v12 = vld [vmem:[%s1096_s29] sm:$0xff]  ;;  %375 = vmatprep.mubr.f32.mxu1 %v236_v6  ;;  %761 = vset.pattern.permute.xlu0 %v918_v60  ;;  %s215_s19 = scalar_lea.vmem [#allocation9], %s575_s17  ;;  %s1187_s6 = scalar_lea.hbm %s1237_s2, %s582_s8 }
  0x5d   : > { %v583_v11 = vpack.c.bf16 %v244_v9, %v242_v8  ;;  %v243_v13 = vld [vmem:[%s1096_s29 + $0x10] sm:$0xff]  ;;  %v246_v14 = vld [vmem:[%s1096_s29 + $0x28] sm:$0xff]  ;;  %v396_v15 = vadd.f32 %v393_v5, %v392_v4  ;;  %v248_v17 = vld [vmem:[%s1096_s29 + $0x38] sm:$0xff]  ;;  %s457_s22 = sshll.u32 %s215_s19, 4  ;;  %s441_s16 = scalar_lea.sflag [#allocation6], %s1092_s3  ;;  %s1182_s22 = int_to_ptr.vmem [resolvable:$true] %s457_s22 }
  0x5e   : > { %v585_v16 = vpack.c.bf16 %v243_v13, %v241_v12  ;;  %v245_v18 = vld [vmem:[%s1096_s29 + $0x20] sm:$0xff]  ;;  %v247_v19 = vld [vmem:[%s1096_s29 + $0x30] sm:$0xff]  ;;  %v587_v20 = vpack.c.bf16 %v248_v17, %v246_v14  ;;  %v250_v21 = vld [vmem:[%s1096_s29 + $0x48] sm:$0xff]  ;;  %v399_v23 = vadd.f32 %v395_v10, %v394_v7  ;;  %s824_s4 = scalar_lea.vmem %s1182_s22, 512  ;;  %p1256_p11 = scmp.ne.s32.totalorder %s1247_s20, 0 }
  0x5f   : > { %584 = vmatprep.subr.bf16.mxu0 %v583_v11  ;;  %647 = vmatprep.subr.bf16.mxu1 %v583_v11  ;;  %v252_v22 = vld [vmem:[%s1096_s29 + $0x58] sm:$0xff]  ;;  %v589_v24 = vpack.c.bf16 %v247_v19, %v245_v18  ;;  %v249_v26 = vld [vmem:[%s1096_s29 + $0x40] sm:$0xff]  ;;  %v251_v27 = vld [vmem:[%s1096_s29 + $0x50] sm:$0xff]  ;;  %p825_p9 = scmp.ne.s32.totalorder %s1182_s22, %s824_s4  ;;  %s919_s12 = smov [#allocation9]  }
  0x60   : > { %397 = vadd.xlane.f32.xlu0 %v396_v15  ;;  %586 = vmatpush1.bf16.msra.mxu0 %v585_v16  ;;  %v591_v25 = vpack.c.bf16 %v252_v22, %v250_v21  ;;  %v254_v28 = vld [vmem:[%s1096_s29 + $0x68] sm:$0xff]  ;;  %v256_v29 = vld [vmem:[%s1096_s29 + $0x78] sm:$0xff]  ;;  %v593_v30 = vpack.c.bf16 %v251_v27, %v249_v26  ;;  %v253_v32 = vld [vmem:[%s1096_s29 + $0x60] sm:$0xff]  ;;  %s828_s23 = sshll.u32 %s919_s12, 4  ;;  %s829_s23 = int_to_ptr.vmem [resolvable:$false] %s828_s23 }
  0x61   : > { %663 = vmatpush1.bf16.msra.mxu1 %v585_v16  ;;  %588 = vmatprep.subr.bf16.mxu0 %v587_v20  ;;  %v595_v31 = vpack.c.bf16 %v256_v29, %v254_v28  ;;  %v255_v33 = vld [vmem:[%s1096_s29 + $0x70] sm:$0xff]  ;;  %v258_v34 = vld [vmem:[%s1096_s29 + $0x88] sm:$0xff]  ;;  %v260_v35 = vld [vmem:[%s1096_s29 + $0x98] sm:$0xff]  ;;  %p826_p4 = pnand %p825_p9, %p1256_p11  ;;  %s830_s28 = scalar_lea.vmem %s829_s23, 1024 }
  0x62   : > { %648 = vmatprep.subr.bf16.mxu1 %v587_v20  ;;  %v597_v36 = vpack.c.bf16 %v255_v33, %v253_v32  ;;  %v599_v37 = vpack.c.bf16 %v260_v35, %v258_v34  ;;  %v257_v38 = vld [vmem:[%s1096_s29 + $0x80] sm:$0xff]  ;;  %v259_v39 = vld [vmem:[%s1096_s29 + $0x90] sm:$0xff]  ;;  %v262_v40 = vld [vmem:[%s1096_s29 + $0xa8] sm:$0xff]  ;;  %p831_p0 = scmp.lt.s32.totalorder %s1182_s22, %s829_s23  ;;  %p832_p10 = scmp.lt.s32.totalorder %s830_s28, %s824_s4 }
  0x63   : > { %v264_v41 = vld [vmem:[%s1096_s29 + $0xb8] sm:$0xff]  ;;  %v601_v42 = vpack.c.bf16 %v259_v39, %v257_v38  ;;  %v261_v44 = vld [vmem:[%s1096_s29 + $0xa0] sm:$0xff]  ;;  %v263_v45 = vld [vmem:[%s1096_s29 + $0xb0] sm:$0xff]  ;;  %p827_p13 = pneg %p826_p4 }
  0x64   : > { %400 = vadd.xlane.f32.xlu0 %v399_v23  ;;  %590 = vmatpush1.bf16.msra.mxu0 %v589_v24  ;;  %v603_v43 = vpack.c.bf16 %v264_v41, %v262_v40  ;;  %v266_v46 = vld [vmem:[%s1096_s29 + $0xc8] sm:$0xff]  ;;  %v268_v47 = vld [vmem:[%s1096_s29 + $0xd8] sm:$0xff]  ;;  %v605_v48 = vpack.c.bf16 %v263_v45, %v261_v44  ;;  %v265_v50 = vld [vmem:[%s1096_s29 + $0xc0] sm:$0xff]  ;;  %p833_p3 = por %p832_p10, %p831_p0 }
  0x65   : > { %664 = vmatpush1.bf16.msra.mxu1 %v589_v24  ;;  %592 = vmatprep.subr.bf16.mxu0 %v591_v25  ;;  %v607_v49 = vpack.c.bf16 %v268_v47, %v266_v46  ;;  %v267_v51 = vld [vmem:[%s1096_s29 + $0xd0] sm:$0xff]  ;;  %v270_v52 = vld [vmem:[%s1096_s29 + $0xe8] sm:$0xff]  ;;  %v272_v53 = vld [vmem:[%s1096_s29 + $0xf8] sm:$0xff] }
  0x66   : > { %649 = vmatprep.subr.bf16.mxu1 %v591_v25  ;;  %v609_v54 = vpack.c.bf16 %v267_v51, %v265_v50  ;;  %v611_v55 = vpack.c.bf16 %v272_v53, %v270_v52  ;;  %v269_v56 = vld [vmem:[%s1096_s29 + $0xe0] sm:$0xff]  ;;  %v271_v57 = vld [vmem:[%s1096_s29 + $0xf0] sm:$0xff]  ;;  %v274_v58 = vld [vmem:[%s1096_s29 + $0x108] sm:$0xff]  ;;  %p834_p6 = pnand %p833_p3, %p827_p13 }
  0x67   : > { %v276_v59 = vld [vmem:[%s1096_s29 + $0x118] sm:$0xff]  ;;  %v613_v61 = vpack.c.bf16 %v271_v57, %v269_v56  ;;  %v273_v63 = vld [vmem:[%s1096_s29 + $0x100] sm:$0xff]  ;;  %v275_v0 = vld [vmem:[%s1096_s29 + $0x110] sm:$0xff] }
  0x68   : > { %594 = vmatpush1.bf16.msra.mxu0 %v593_v30  ;;  %v615_v62 = vpack.c.bf16 %v276_v59, %v274_v58  ;;  %v278_v2 = vld [vmem:[%s1096_s29 + $0x128] sm:$0xff]  ;;  %v280_v4 = vld [vmem:[%s1096_s29 + $0x138] sm:$0xff]  ;;  %v617_v5 = vpack.c.bf16 %v275_v0, %v273_v63  ;;  %v277_v7 = vld [vmem:[%s1096_s29 + $0x120] sm:$0xff] }
  0x69   : > { %665 = vmatpush1.bf16.msra.mxu1 %v593_v30  ;;  %596 = vmatprep.subr.bf16.mxu0 %v595_v31  ;;  %v619_v6 = vpack.c.bf16 %v280_v4, %v278_v2  ;;  %v279_v8 = vld [vmem:[%s1096_s29 + $0x130] sm:$0xff]  ;;  %v282_v9 = vld [vmem:[%s1096_s29 + $0x148] sm:$0xff]  ;;  %v284_v10 = vld [vmem:[%s1096_s29 + $0x158] sm:$0xff] }
  0x6a   : > { %650 = vmatprep.subr.bf16.mxu1 %v595_v31  ;;  %v621_v11 = vpack.c.bf16 %v279_v8, %v277_v7  ;;  %v623_v12 = vpack.c.bf16 %v284_v10, %v282_v9  ;;  %v281_v13 = vld [vmem:[%s1096_s29 + $0x140] sm:$0xff]  ;;  %v283_v14 = vld [vmem:[%s1096_s29 + $0x150] sm:$0xff]  ;;  %v286_v15 = vld [vmem:[%s1096_s29 + $0x168] sm:$0xff] }
  0x6b   : > { %v288_v16 = vld [vmem:[%s1096_s29 + $0x178] sm:$0xff]  ;;  %v625_v17 = vpack.c.bf16 %v283_v14, %v281_v13  ;;  %v285_v19 = vld [vmem:[%s1096_s29 + $0x160] sm:$0xff]  ;;  %v287_v20 = vld [vmem:[%s1096_s29 + $0x170] sm:$0xff] }
  0x6c   : > { %598 = vmatpush1.bf16.msra.mxu0 %v597_v36  ;;  %v627_v18 = vpack.c.bf16 %v288_v16, %v286_v15  ;;  %v290_v21 = vld [vmem:[%s1096_s29 + $0x188] sm:$0xff]  ;;  %v292_v22 = vld [vmem:[%s1096_s29 + $0x198] sm:$0xff]  ;;  %v629_v23 = vpack.c.bf16 %v287_v20, %v285_v19  ;;  %v289_v25 = vld [vmem:[%s1096_s29 + $0x180] sm:$0xff] }
  0x6d   : > { %666 = vmatpush1.bf16.msra.mxu1 %v597_v36  ;;  %600 = vmatprep.subr.bf16.mxu0 %v599_v37  ;;  %v631_v24 = vpack.c.bf16 %v292_v22, %v290_v21  ;;  %v291_v26 = vld [vmem:[%s1096_s29 + $0x190] sm:$0xff]  ;;  %v294_v27 = vld [vmem:[%s1096_s29 + $0x1a8] sm:$0xff]  ;;  %v296_v28 = vld [vmem:[%s1096_s29 + $0x1b8] sm:$0xff] }
  0x6e   : > { %651 = vmatprep.subr.bf16.mxu1 %v599_v37  ;;  %v633_v29 = vpack.c.bf16 %v291_v26, %v289_v25  ;;  %v635_v30 = vpack.c.bf16 %v296_v28, %v294_v27  ;;  %v293_v31 = vld [vmem:[%s1096_s29 + $0x1a0] sm:$0xff]  ;;  %v295_v32 = vld [vmem:[%s1096_s29 + $0x1b0] sm:$0xff]  ;;  %v298_v33 = vld [vmem:[%s1096_s29 + $0x1c8] sm:$0xff] }
  0x6f   : > { %v300_v34 = vld [vmem:[%s1096_s29 + $0x1d8] sm:$0xff]  ;;  %v637_v35 = vpack.c.bf16 %v295_v32, %v293_v31  ;;  %v297_v37 = vld [vmem:[%s1096_s29 + $0x1c0] sm:$0xff]  ;;  %v299_v38 = vld [vmem:[%s1096_s29 + $0x1d0] sm:$0xff] }
  0x70   : > { %602 = vmatpush1.bf16.msra.mxu0 %v601_v42  ;;  %v639_v36 = vpack.c.bf16 %v300_v34, %v298_v33  ;;  %v302_v39 = vld [vmem:[%s1096_s29 + $0x1e8] sm:$0xff]  ;;  %v304_v40 = vld [vmem:[%s1096_s29 + $0x1f8] sm:$0xff]  ;;  %v641_v41 = vpack.c.bf16 %v299_v38, %v297_v37  ;;  %v303_v44 = vld [vmem:[%s1096_s29 + $0x1f0] sm:$0xff] }
  0x71   : > { %667 = vmatpush1.bf16.msra.mxu1 %v601_v42  ;;  %604 = vmatprep.subr.bf16.mxu0 %v603_v43  ;;  %v643_v42 = vpack.c.bf16 %v304_v40, %v302_v39  ;;  %v390_v46 = vld [vmem:[#allocation3] sm:$0xff] }
  0x72   : > { %652 = vmatprep.subr.bf16.mxu1 %v603_v43  ;;  %v301_v43 = vld [vmem:[%s1096_s29 + $0x1e0] sm:$0xff] }
  0x73   : > { %v645_v45 = vpack.c.bf16 %v303_v44, %v301_v43 }
  0x74   : > { %606 = vmatpush1.bf16.msra.mxu0 %v605_v48 }
  0x75   : > { %668 = vmatpush1.bf16.msra.mxu1 %v605_v48  ;;  %608 = vmatprep.subr.bf16.mxu0 %v607_v49 }
  0x76   : > { %653 = vmatprep.subr.bf16.mxu1 %v607_v49  ;;  %v391_v49 = vld [vmem:[#allocation3 + $0x8] sm:$0xff] }
  0x78   : > { %610 = vmatpush1.bf16.msra.mxu0 %v609_v54 }
  0x79   : > { %669 = vmatpush1.bf16.msra.mxu1 %v609_v54  ;;  %612 = vmatprep.subr.bf16.mxu0 %v611_v55 }
  0x7a   : > { %654 = vmatprep.subr.bf16.mxu1 %v611_v55 }
  0x7c   : > { %614 = vmatpush1.bf16.msra.mxu0 %v613_v61 }
  0x7d   : > { %670 = vmatpush1.bf16.msra.mxu1 %v613_v61  ;;  %616 = vmatprep.subr.bf16.mxu0 %v615_v62 }
  0x7e   : > { %655 = vmatprep.subr.bf16.mxu1 %v615_v62 }
  0x80   : > { %618 = vmatpush1.bf16.msra.mxu0 %v617_v5 }
  0x81   : > { %671 = vmatpush1.bf16.msra.mxu1 %v617_v5  ;;  %620 = vmatprep.subr.bf16.mxu0 %v619_v6 }
  0x82   : > { %656 = vmatprep.subr.bf16.mxu1 %v619_v6 }
  0x84   : > { %622 = vmatpush1.bf16.msra.mxu0 %v621_v11 }
  0x85   : > { %672 = vmatpush1.bf16.msra.mxu1 %v621_v11  ;;  %624 = vmatprep.subr.bf16.mxu0 %v623_v12 }
  0x86   : > { %657 = vmatprep.subr.bf16.mxu1 %v623_v12 }
  0x88   : > { %626 = vmatpush1.bf16.msra.mxu0 %v625_v17 }
  0x89   : > { %673 = vmatpush1.bf16.msra.mxu1 %v625_v17  ;;  %628 = vmatprep.subr.bf16.mxu0 %v627_v18 }
  0x8a   : > { %658 = vmatprep.subr.bf16.mxu1 %v627_v18 }
  0x8c   : > { %630 = vmatpush1.bf16.msra.mxu0 %v629_v23 }
  0x8d   : > { %674 = vmatpush1.bf16.msra.mxu1 %v629_v23  ;;  %632 = vmatprep.subr.bf16.mxu0 %v631_v24 }
  0x8e   : > { %659 = vmatprep.subr.bf16.mxu1 %v631_v24 }
  0x90   : > { %634 = vmatpush1.bf16.msra.mxu0 %v633_v29 }
  0x91   : > { %675 = vmatpush1.bf16.msra.mxu1 %v633_v29  ;;  %636 = vmatprep.subr.bf16.mxu0 %v635_v30 }
  0x92   : > { %660 = vmatprep.subr.bf16.mxu1 %v635_v30 }
  0x94   : > { %638 = vmatpush1.bf16.msra.mxu0 %v637_v35 }
  0x95   : > { %676 = vmatpush1.bf16.msra.mxu1 %v637_v35  ;;  %640 = vmatprep.subr.bf16.mxu0 %v639_v36 }
  0x96   : > { %661 = vmatprep.subr.bf16.mxu1 %v639_v36 }
  0x98   : > { %642 = vmatpush1.bf16.msra.mxu0 %v641_v41 }
  0x99   : > { %677 = vmatpush1.bf16.msra.mxu1 %v641_v41  ;;  %644 = vmatprep.subr.bf16.mxu0 %v643_v42 }
  0x9a   : > { %662 = vmatprep.subr.bf16.mxu1 %v643_v42 }
  0x9c   : > { %646 = vmatpush1.bf16.msra.mxu0 %v645_v45 }
  0x9d   : > { %678 = vmatpush1.bf16.msra.mxu1 %v645_v45 }
  0x9f   : > { %370 = vmatmul.mubr.f32.vlgmr.msra.gmra.mrb[0].mxu0 %v1104_v1 }
  0xa0   : > { %376 = vmatmul.mubr.f32.vlgmr.msra.gmra.mrb[0].mxu1 %v1106_v3 }
  0xed   : > { %v398_v47 = vpop.xlane.xlu0 %397 }
  0xee   : > { %v402_v48 = vadd.f32 %v398_v47, %v390_v46 }
  0xf0   : > { %405 = vst.msk [vmem:[#allocation3] sm:$0xff] %vm230_vm0, %v402_v48 }
  0xf1   : > { %v401_v50 = vpop.xlane.xlu0 %400 }
  0xf2   : > { %v403_v51 = vadd.f32 %v401_v50, %v391_v49 }
  0xf4   : > { %406 = vst.msk [vmem:[#allocation3 + $0x8] sm:$0xff] %vm230_vm0, %v403_v51 }
  0xf7   : > { %v410_v52 = vld [vmem:[#allocation3] sm:$0xff] }
  0xf8   : > { %v412_v53 = vmul.f32 0.00390625, %v410_v52 }
  0xfa   : > { %v414_v54 = vadd.f32 1e-06, %v412_v53 }
  0xfb   : > { %v411_v55 = vld [vmem:[#allocation3 + $0x8] sm:$0xff] }
  0xfc   : > { %762 = vrsqrt.f32 %v414_v54  ;;  %v413_v56 = vmul.f32 0.00390625, %v411_v55 }
  0xfe   : > { %v415_v1 = vadd.f32 1e-06, %v413_v56 }
 0x100   : > { %764 = vrsqrt.f32 %v415_v1 }
 0x106   : > { %v763_v3 = vpop.eup %762 }
 0x107   : > { %424 = vperm.xlu1 %760, %v763_v3  }
 0x10a   : > { %v765_v57 = vpop.eup %764 }
 0x10b   : > { %429 = vperm.xlu1 %760, %v765_v57  }
 0x172   : > { %v371_v58 = vpop.f32.mrb[0].mxu0 }
 0x173   : > { %v373_v59 = vpop.f32.mrb[1].mxu0  ;;  %v377_v60 = vpop.f32.mrb[0].mxu1 }
 0x174   : > { %v379_v61 = vpop.f32.mrb[1].mxu1 }
 0x186   : > { %v425_v62 = vpop.permute.xlu1 %424 }
 0x187   : > { %v432_v63 = vmul.f32 %v425_v62, %v371_v58  ;;  %v433_v0 = vmul.f32 %v425_v62, %v373_v59 }
 0x189   : > { %436 = vst [vmem:[%s215_s19] sm:$0xff] %v432_v63  ;;  %437 = vst [vmem:[%s215_s19 + $0x8] sm:$0xff] %v433_v0 }
 0x18a   : > { %v430_v2 = vpop.permute.xlu1 %429 }
 0x18b   : > { %v434_v4 = vmul.f32 %v430_v2, %v377_v60  ;;  %v435_v5 = vmul.f32 %v430_v2, %v379_v61 }
 0x18d   : > { %438 = vst [vmem:[%s215_s19 + $0x10] sm:$0xff] %v434_v4  ;;  %439 = vst [vmem:[%s215_s19 + $0x18] sm:$0xff] %v435_v5 }
 0x18e   : > { %837 = shalt.err (!%p834_p6)
}
 0x18f   : > { %s838_s24 = scalar_lea.hbm %s1187_s6, 512  ;;  %s842_s26 = scalar_lea.hbm %s1237_s2, 1536 }
 0x190   : > { %p839_p1 = scmp.ne.s32.totalorder %s1187_s6, %s838_s24  ;;  %p843_p12 = scmp.lt.u32.totalorder %s1187_s6, %s1237_s2 }
 0x191   : > { %p844_p2 = scmp.lt.u32.totalorder %s842_s26, %s838_s24  ;;  %p846_p9 = scmp.lt.u32.totalorder %s838_s24, %s1187_s6 }
 0x192   : > { %p840_p5 = pnand %p839_p1, %p1256_p11 }
 0x193   : > { %p845_p8 = por %p844_p2, %p843_p12 }
 0x194   : > { %p841_p7 = pneg %p840_p5 }
 0x195   : > { %p847_p4 = por %p846_p9, %p845_p8 }
 0x197   : > { %p848_p13 = pnand %p847_p4, %p841_p7 }
 0x199   : > { %851 = shalt.err (!%p848_p13)
}
 0x19a   : > { %s920_s17 = smov 256   ;;  %s921_s19 = smov 768  }
 0x19b   : > { %s922_s8 = smov 16  }
 0x19c   : > { %685 = dma.vmem_to_hbm [thread:$0]  (%p1256_p11), %s1182_s22, 512, %s1187_s6, %s441_s16, %s920_s17, %s921_s19, %s922_s8  }
 0x19d PF: > { %p702_p0 = scmp.ge.s32.totalorder %s910_s14, 2  ;;  %s472_s15 = sand.u32 1, %s890_s9  }
 0x19e   : > { %p1257_p10 = scmp.ne.s32.totalorder %s1248_s21, 0  ;;  %s473_s5 = scalar_lea.sflag [#allocation6], %s472_s15 }
 0x1a0   : > { %p696_p3 = pnand %p702_p0, %p1257_p10 }
 0x1a2   : > { %885 = dma.done.wait (!%p696_p3), %s473_s5, 512  }
 0x1a3   : > { %887 = vsyncadd (!%p696_p3), %s473_s5, 4294966784  ;;  %s19_s14 = sadd.s32 1, %s910_s14   ;;  %s1258_s9 = smov %s894_s10 }
 0x1a4   : > { %p16_p6 = scmp.ge.s32.totalorder %s19_s14, 5   ;;  %s1259_s10 = smov %s898_s11 }
 0x1a5   : > { %s1260_s11 = smov %s1051_s7  ;;  %s1261_s12 = smov %s906_s13 }
 0x1a6   : > { %s1262_s13 = smov %s1264_s27  ;;  %18 = sbr.rel (!%p16_p6) target bundleno = 7 (0x7), region = 87 }
 0x1ad   :  { %478 = vsyncpa [#allocation5], 1 }
 0x1ae   :  { %480 = vsyncpa [#allocation5 + $0x1], 1 }
 0x1af   :  { %481 = vsyncpa [#allocation8], 1 }
 0x1b0   :  { %483 = vsyncpa [#allocation8 + $0x1], 1 }
 0x1b1   :  { %484 = vsyncpa [#allocation6], 1 }
 0x1b2   :  { %486 = vsyncpa [#allocation6 + $0x1], 1 }

</bundles_post_ra>
